<compile_context>
chip_gen: v6e
topology: v6e:2x2x1
jax: 0.10.0
libtpu: 0.0.40
codegen_flags: <defaults>
</compile_context>

<pallas_src>
import jax
import jax.numpy as jnp
from jax import lax
from jax.experimental import pallas as pl
from jax.experimental.pallas import tpu as pltpu


_LANE = 128
_SUBLANE = 8


def _cdiv(a, b):
    return (a + b - 1) // b


def _round_up(a, b):
    return _cdiv(a, b) * b


def _max_pool_kernel(x_ref, max_ref, idx_ref):
    # x_ref block: (tT, tm). Grid = (M tiles [parallel], T tiles [arbitrary]).
    # Output blocks (1, tm) are VMEM-resident across the T axis and act as
    # running max / argmax accumulators.
    k = pl.program_id(1)
    x = x_ref[...]
    tT = x.shape[0]
    is_float = jnp.issubdtype(x.dtype, jnp.floating)

    blk_max = jnp.max(x, axis=0, keepdims=True)                   # (1, tm)

    # argmax over dim 0 with first-index tie-break (matches torch / jnp.argmax).
    match = x == blk_max
    if is_float:
        match = match | jnp.isnan(x)     # NaN column -> first NaN index
    row = lax.broadcasted_iota(jnp.int32, x.shape, 0)              # sublane iota
    blk_idx = jnp.min(jnp.where(match, row, jnp.int32(tT)),
                      axis=0, keepdims=True) + k * tT              # global index

    @pl.when(k == 0)
    def _():
        max_ref[...] = blk_max.astype(max_ref.dtype)
        idx_ref[...] = blk_idx

    @pl.when(k > 0)
    def _():
        prev = max_ref[...]
        new = blk_max.astype(prev.dtype)
        better = new > prev              # strict: earlier T-block wins ties
        if is_float:
            better = better | (jnp.isnan(new) & ~jnp.isnan(prev))
        max_ref[...] = jnp.where(better, new, prev)
        idx_ref[...] = jnp.where(better, blk_idx, idx_ref[...])


def ref_max_pool(inp, *, block_budget_bytes=None):
    """inp: (T, *rest). Returns (maximums (1, *rest), indices (*rest), int32).

    Equivalent to: maximums, indices = torch.max(inp, dim=0);
                   return (maximums.unsqueeze(0), indices)
    """
    T = inp.shape[0]
    rest = inp.shape[1:]
    M = 1
    for d in rest:
        M *= d
    x = inp.reshape(T, M)
    itemsize = x.dtype.itemsize

    # ---- per-generation VMEM budget ---------------------------------------
    try:
        vmem_capacity = int(pltpu.get_tpu_info().vmem_capacity_bytes)
    except Exception:
        vmem_capacity = 64 * 1024 * 1024            # conservative (v7x-sized)
    if block_budget_bytes is None:
        # ~8 MiB per input block on v7x (64 MiB VMEM), ~16 MiB on v5e/v6e.
        block_budget = min(16 * 1024 * 1024, vmem_capacity // 8)
    else:
        block_budget = int(block_budget_bytes)

    M128 = _round_up(max(M, 1), _LANE)
    min_lanes = min(512, M128)

    # ---- choose (tT, tm) from the byte budget ------------------------------
    if T * min_lanes * itemsize <= block_budget:
        # Whole-T path: reduce dim 0 in one shot per lane tile.
        tT = T
        T_pad = T
        tm_budget = (block_budget // max(T * itemsize, 1)) // _LANE * _LANE
        tm_ideal = max(_LANE, min(tm_budget, M128))
    else:
        # Large-T path: tile T as well; accumulate across the trailing axis.
        tm_ideal = min_lanes
        tT = (block_budget // (tm_ideal * itemsize)) // _SUBLANE * _SUBLANE
        tT = max(_SUBLANE, min(tT, _round_up(T, _SUBLANE)))
        T_pad = _round_up(T, tT)

    # Parallelism: when M is big, keep >= 8 lane tiles so the "parallel" grid
    # axis actually distributes across TensorCores (v7x megacore).
    if M128 >= 8 * 512:
        tm_ideal = min(tm_ideal, max(512, _round_up(_cdiv(M128, 8), _LANE)))

    n_m = _cdiv(M128, tm_ideal)
    tm = _round_up(_cdiv(M128, n_m), _LANE)
    M_pad = n_m * tm
    n_t = T_pad // tT

    # ---- pad to (T_pad, M_pad): lane pads are garbage (sliced off), T pads
    #      use the dtype minimum so they never win the max. ------------------
    if M_pad != M or T_pad != T:
        if jnp.issubdtype(x.dtype, jnp.floating):
            pad_val = -jnp.inf
        elif jnp.issubdtype(x.dtype, jnp.bool_):
            pad_val = False
        else:
            pad_val = jnp.iinfo(x.dtype).min
        x = jnp.pad(x, ((0, T_pad - T), (0, M_pad - M)), constant_values=pad_val)

    grid = (n_m, n_t)
    in_spec = pl.BlockSpec((tT, tm), lambda i, k: (k, i))
    out_specs = (pl.BlockSpec((1, tm), lambda i, k: (0, i)),
                 pl.BlockSpec((1, tm), lambda i, k: (0, i)))

    # Advisory cost for the XLA scheduler: this is a pure HBM-BW reduction.
    cost = pl.CostEstimate(
        flops=2 * T_pad * M_pad,
        transcendentals=0,
        bytes_accessed=T_pad * M_pad * itemsize + M_pad * (itemsize + 4),
    )

    # Explicit scoped-VMEM limit: double-buffered input block + output blocks.
    vmem_need = 2 * tT * tm * itemsize + 2 * tm * (itemsize + 4) + (1 << 20)
    vmem_limit = int(min(vmem_capacity * 3 // 4,
                         max(vmem_need + (4 << 20), 32 << 20)))

    maxv, idx = pl.pallas_call(
        _max_pool_kernel,
        out_shape=(
            jax.ShapeDtypeStruct((1, M_pad), inp.dtype),
            jax.ShapeDtypeStruct((1, M_pad), jnp.int32),
        ),
        grid_spec=pltpu.PrefetchScalarGridSpec(
            num_scalar_prefetch=0,
            grid=grid,
            in_specs=[in_spec],
            out_specs=out_specs,
        ),
        compiler_params=pltpu.CompilerParams(
            dimension_semantics=("parallel", "arbitrary"),
            vmem_limit_bytes=vmem_limit,
        ),
        cost_estimate=cost,
    )(x)

    maximums = maxv[:, :M].reshape((1,) + rest)
    indices = idx[0, :M].reshape(rest)
    return maximums, indices


def _reference(inp):
    return jnp.max(inp, axis=0, keepdims=True), jnp.argmax(inp, axis=0).astype(jnp.int32)


if __name__ == "__main__":
    # 1) seq-major features (seq=8, batch=4, hidden=32): lane-aligned M = 128.
    T, B, H = 8, 4, 32
    inp = jax.random.normal(jax.random.PRNGKey(0), (T, B, H), dtype=jnp.float32)
    maximums, indices = ref_max_pool(inp)
    jax.block_until_ready((maximums, indices))
    ref_max, ref_idx = _reference(inp)
    assert maximums.shape == (1, B, H), maximums.shape
    assert indices.shape == (B, H), indices.shape
    assert jnp.allclose(maximums, ref_max)
    assert jnp.array_equal(indices, ref_idx)

    # 2) awkward trailing size (M = 45) and T not a multiple of 8 -> lane padding path.
    inp2 = jax.random.normal(jax.random.PRNGKey(1), (7, 5, 9), dtype=jnp.float32)
    m2, i2 = ref_max_pool(inp2)
    jax.block_until_ready((m2, i2))
    r2m, r2i = _reference(inp2)
    assert m2.shape == (1, 5, 9) and i2.shape == (5, 9)
    assert jnp.allclose(m2, r2m)
    assert jnp.array_equal(i2, r2i)

    # 3) force the T-tiled accumulator path with a tiny block budget.
    inp3 = jax.random.normal(jax.random.PRNGKey(2), (100, 4, 32), dtype=jnp.float32)
    m3, i3 = ref_max_pool(inp3, block_budget_bytes=16 * 1024)
    jax.block_until_ready((m3, i3))
    r3m, r3i = _reference(inp3)
    assert jnp.allclose(m3, r3m)
    assert jnp.array_equal(i3, r3i)

    # 4) ties across T blocks (all rows identical) -> first occurrence (index 0) must win.
    row4 = jax.random.normal(jax.random.PRNGKey(3), (1, 4, 32), dtype=jnp.float32)
    inp4 = jnp.broadcast_to(row4, (64, 4, 32)).astype(jnp.float32)
    m4, i4 = ref_max_pool(inp4, block_budget_bytes=16 * 1024)
    jax.block_until_ready((m4, i4))
    assert jnp.array_equal(i4, jnp.zeros((4, 32), jnp.int32))
    assert jnp.allclose(m4[0], inp4[0])

    print("KERNEL_OK")
</pallas_src>

<mosaic_0001>
module attributes {stable_mosaic.version = 11 : i64} {
  func.func @_max_pool_kernel(%arg0: i32, %arg1: i32, %arg2: memref<8x128xf32, #tpu.memory_space<vmem>>, %arg3: memref<1x128xf32, #tpu.memory_space<vmem>>, %arg4: memref<1x128xi32, #tpu.memory_space<vmem>>) attributes {dimension_semantics = [#tpu.dimension_semantics<parallel>, #tpu.dimension_semantics<arbitrary>], iteration_bounds = array<i64: 1, 1>, scalar_prefetch = 0 : i64, scratch_operands = 0 : i64, tpu.core_type = #tpu.core_type<tc>, window_params = [{transform_indices = @transform_0, window_bounds = array<i64: 8, 128>}, {transform_indices = @transform_1, window_bounds = array<i64: 1, 128>}, {transform_indices = @transform_2, window_bounds = array<i64: 1, 128>}]} {
    %c0 = arith.constant 0 : index
    %c0_0 = arith.constant 0 : index
    %0 = vector.load %arg2[%c0, %c0_0] : memref<8x128xf32, #tpu.memory_space<vmem>>, vector<8x128xf32>
    %cst = arith.constant dense<0xFF800000> : vector<128xf32>
    %1 = vector.multi_reduction <maximumf>, %0, %cst [0] : vector<8x128xf32> to vector<128xf32>
    %2 = vector.shape_cast %1 : vector<128xf32> to vector<1x128xf32>
    %3 = vector.broadcast %2 : vector<1x128xf32> to vector<8x128xf32>
    %4 = arith.cmpf oeq, %0, %3 : vector<8x128xf32>
    %5 = arith.cmpf one, %0, %0 : vector<8x128xf32>
    %6 = arith.ori %4, %5 : vector<8x128xi1>
    %7 = tpu.iota {dimensions = array<i32: 0>} : vector<8x128xi32>
    %c8_i32 = arith.constant 8 : i32
    %8 = vector.broadcast %c8_i32 : i32 to vector<8x128xi32>
    %9 = arith.select %6, %7, %8 : vector<8x128xi1>, vector<8x128xi32>
    %cst_1 = arith.constant dense<2147483647> : vector<128xi32>
    %10 = vector.multi_reduction <minsi>, %9, %cst_1 [0] : vector<8x128xi32> to vector<128xi32>
    %11 = vector.shape_cast %10 : vector<128xi32> to vector<1x128xi32>
    %c8_i32_2 = arith.constant 8 : i32
    %12 = arith.muli %arg1, %c8_i32_2 : i32
    %13 = vector.broadcast %12 : i32 to vector<1x128xi32>
    %14 = arith.addi %11, %13 : vector<1x128xi32>
    %c0_i32 = arith.constant 0 : i32
    %15 = arith.cmpi eq, %arg1, %c0_i32 : i32
    %16 = arith.extui %15 : i1 to i32
    %c0_i32_3 = arith.constant 0 : i32
    %17 = arith.cmpi ne, %16, %c0_i32_3 : i32
    scf.if %17 {
      %c0_6 = arith.constant 0 : index
      %c0_7 = arith.constant 0 : index
      %21 = vector.load %arg3[%c0_6, %c0_7] : memref<1x128xf32, #tpu.memory_space<vmem>>, vector<1x128xf32>
      tpu.vector_store %arg3[%c0_6, %c0_7], %2 {strides = array<i32>} : memref<1x128xf32, #tpu.memory_space<vmem>>, vector<1x128xf32>,
      %c0_8 = arith.constant 0 : index
      %c0_9 = arith.constant 0 : index
      %22 = vector.load %arg4[%c0_8, %c0_9] : memref<1x128xi32, #tpu.memory_space<vmem>>, vector<1x128xi32>
      tpu.vector_store %arg4[%c0_8, %c0_9], %14 {strides = array<i32>} : memref<1x128xi32, #tpu.memory_space<vmem>>, vector<1x128xi32>,
    } else {
    }
    %c0_i32_4 = arith.constant 0 : i32
    %18 = arith.cmpi sgt, %arg1, %c0_i32_4 : i32
    %19 = arith.extui %18 : i1 to i32
    %c0_i32_5 = arith.constant 0 : i32
    %20 = arith.cmpi ne, %19, %c0_i32_5 : i32
    scf.if %20 {
      %c0_6 = arith.constant 0 : index
      %c0_7 = arith.constant 0 : index
      %21 = vector.load %arg3[%c0_6, %c0_7] : memref<1x128xf32, #tpu.memory_space<vmem>>, vector<1x128xf32>
      %22 = arith.cmpf ogt, %2, %21 : vector<1x128xf32>
      %23 = arith.cmpf one, %2, %2 : vector<1x128xf32>
      %24 = arith.cmpf one, %21, %21 : vector<1x128xf32>
      %cst_8 = arith.constant dense<true> : vector<1x128xi1>
      %25 = arith.xori %24, %cst_8 : vector<1x128xi1>
      %26 = arith.andi %23, %25 : vector<1x128xi1>
      %27 = arith.ori %22, %26 : vector<1x128xi1>
      %28 = arith.select %27, %2, %21 : vector<1x128xi1>, vector<1x128xf32>
      %c0_9 = arith.constant 0 : index
      %c0_10 = arith.constant 0 : index
      %29 = vector.load %arg3[%c0_9, %c0_10] : memref<1x128xf32, #tpu.memory_space<vmem>>, vector<1x128xf32>
      tpu.vector_store %arg3[%c0_9, %c0_10], %28 {strides = array<i32>} : memref<1x128xf32, #tpu.memory_space<vmem>>, vector<1x128xf32>,
      %c0_11 = arith.constant 0 : index
      %c0_12 = arith.constant 0 : index
      %30 = vector.load %arg4[%c0_11, %c0_12] : memref<1x128xi32, #tpu.memory_space<vmem>>, vector<1x128xi32>
      %31 = arith.select %27, %14, %30 : vector<1x128xi1>, vector<1x128xi32>
      %c0_13 = arith.constant 0 : index
      %c0_14 = arith.constant 0 : index
      %32 = vector.load %arg4[%c0_13, %c0_14] : memref<1x128xi32, #tpu.memory_space<vmem>>, vector<1x128xi32>
      tpu.vector_store %arg4[%c0_13, %c0_14], %31 {strides = array<i32>} : memref<1x128xi32, #tpu.memory_space<vmem>>, vector<1x128xi32>,
    } else {
    }
    return
  }
  func.func @transform_0(%arg0: i32, %arg1: i32) -> (i32, i32) {
    %c0_i32 = arith.constant 0 : i32
    return %arg1, %arg0 : i32, i32
  }
  func.func @transform_1(%arg0: i32, %arg1: i32) -> (i32, i32) {
    %c0_i32 = arith.constant 0 : i32
    %c0_i32_0 = arith.constant 0 : i32
    return %c0_i32, %arg0 : i32, i32
  }
  func.func @transform_2(%arg0: i32, %arg1: i32) -> (i32, i32) {
    %c0_i32 = arith.constant 0 : i32
    %c0_i32_0 = arith.constant 0 : i32
    return %c0_i32, %arg0 : i32, i32
  }
}

</mosaic_0001>

<bundles_post_ra>
// kernel: tpu_custom_call.1
= control target key start
LH: loop header
LB: loop body
LE: loop exit
PB: predicated region body
PF: predicated region fallthrough
CT: control target
= control target key end

     0   :  { %8 = vsyncpa [#allocation3], 0  ;;  %s196_s0 = inlined_call_operand.hbm [shape: f32[8,128], index: 0, kind: input, shape index: {}]   ;;  %s197_s1 = inlined_call_operand.hbm [shape: f32[1,128], index: 1, kind: output, shape index: {0}]   ;;  %s198_s2 = inlined_call_operand.hbm [shape: s32[1,128], index: 2, kind: output, shape index: {1}]  }
   0x1   :  { %9 = vsyncpa [#allocation4], 0 }
   0x2   :  { %10 = vsyncpa [#allocation7], 0  ;;  %s169_s9 = smov [#allocation2]  }
   0x3   :  { %s17_s10 = sshll.u32 %s169_s9, 4  ;;  %s18_s10 = int_to_ptr.vmem [resolvable:$true] %s17_s10 }
   0x4   :  { %s111_s11 = scalar_lea.vmem %s18_s10, 128  ;;  %p116_p1 = scmp.lt.s32.totalorder %s18_s10, %s18_s10 }
   0x5   :  { %p112_p0 = scmp.ne.s32.totalorder %s18_s10, %s111_s11  ;;  %p117_p2 = scmp.lt.s32.totalorder %s111_s11, %s111_s11 }
   0x7   :  { %p118_p3 = por %p117_p2, %p116_p1 }
   0x9   :  { %p119_p4 = pnand %p118_p3, %p112_p0 }
   0xb   :  { %122 = shalt.err (!%p119_p4)
}
   0xc   :  { %20 = dma.hbm_to_vmem [thread:$0]  %s196_s0, 128, %s18_s10, [#allocation3]  }
   0xd   :  { %163 = dma.done.wait [#allocation3], 128  }
   0xe   :  { %164 = vsyncadd [#allocation3], 4294967168  ;;  %v24_v0 = vld [vmem:[#allocation2] sm:$0xff]  ;;  %v34_v5 = vlaneseq  ;;  %s170_s14 = smov [#allocation5]  }
   0xf   :  { %v25_v1 = vrot.slane %v24_v0, 4  ;;  %s77_s15 = sshll.u32 %s170_s14, 4  ;;  %vm32_vm0 = vcmp.ne.f32.partialorder %v24_v0, %v24_v0  ;;  %s78_s15 = int_to_ptr.vmem [resolvable:$true] %s77_s15 }
  0x10   :  { %v35_v8 = vshrl.u32 %v34_v5, 7  ;;  %s123_s16 = scalar_lea.vmem %s78_s15, 16  ;;  %s127_s0 = scalar_lea.vmem %s78_s15, 32 }
  0x11   :  { %v26_v2 = vmax.f32 %v24_v0, %v25_v1  ;;  %p124_p5 = scmp.ne.s32.totalorder %s78_s15, %s123_s16  ;;  %p128_p6 = scmp.lt.s32.totalorder %s78_s15, %s78_s15 }
  0x12   :  { %p129_p7 = scmp.lt.s32.totalorder %s127_s0, %s123_s16 }
  0x13   :  { %v27_v3 = vrot.slane %v26_v2, 2 }
  0x14   :  { %p130_p8 = por %p129_p7, %p128_p6 }
  0x15   :  { %v28_v4 = vmax.f32 %v26_v2, %v27_v3 }
  0x16   :  { %p131_p9 = pnand %p130_p8, %p124_p5 }
  0x17   :  { %v29_v6 = vrot.slane %v28_v4, 1 }
  0x19   :  { %v30_v7 = vmax.f32 %v28_v4, %v29_v6 }
  0x1b   :  { %vm31_vm1 = vcmp.eq.f32.partialorder %v24_v0, %v30_v7  ;;  %53 = vst [vmem:[#allocation5] sm:$0x1] %v30_v7 }
  0x1c   :  { %vm33_vm2 = vmor %vm31_vm1, %vm32_vm0 }
  0x1d   :  { %134 = shalt.err (!%p131_p9)
}
  0x1e   :  { %80 = dma.vmem_to_hbm [thread:$0]  %s78_s15, 16, %s197_s1, [#allocation4]   ;;  %v36_v9 = vsel %vm33_vm2, %v35_v8, 8 }
  0x1f   :  { %v37_v10 = vrot.slane %v36_v9, 4  ;;  %s171_s19 = smov [#allocation6]  }
  0x20   :  { %s87_s20 = sshll.u32 %s171_s19, 4  ;;  %s88_s20 = int_to_ptr.vmem [resolvable:$true] %s87_s20 }
  0x21   :  { %vm38_vm3 = vcmp.lt.s32.totalorder %v36_v9, %v37_v10  ;;  %s143_s21 = scalar_lea.vmem %s88_s20, 16  ;;  %s147_s22 = scalar_lea.vmem %s88_s20, 32 }
  0x22   :  { %v39_v11 = vsel %vm38_vm3, %v36_v9, %v37_v10  ;;  %p144_p10 = scmp.ne.s32.totalorder %s88_s20, %s143_s21  ;;  %p148_p11 = scmp.lt.s32.totalorder %s88_s20, %s88_s20 }
  0x23   :  { %v40_v12 = vrot.slane %v39_v11, 2  ;;  %p149_p12 = scmp.lt.s32.totalorder %s147_s22, %s143_s21 }
  0x25   :  { %vm41_vm4 = vcmp.lt.s32.totalorder %v39_v11, %v40_v12  ;;  %p150_p13 = por %p149_p12, %p148_p11 }
  0x26   :  { %v42_v13 = vsel %vm41_vm4, %v39_v11, %v40_v12 }
  0x27   :  { %v43_v14 = vrot.slane %v42_v13, 1  ;;  %p151_p0 = pnand %p150_p13, %p144_p10 }
  0x29   :  { %vm44_vm5 = vcmp.lt.s32.totalorder %v42_v13, %v43_v14 }
  0x2a   :  { %v45_v15 = vsel %vm44_vm5, %v42_v13, %v43_v14 }
  0x2b   :  { %54 = vst [vmem:[#allocation6] sm:$0x1] %v45_v15 }
  0x2c   :  { %154 = shalt.err (!%p151_p0)
}
  0x2d   :  { %90 = dma.vmem_to_hbm [thread:$0]  %s88_s20, 16, %s198_s2, [#allocation7]  }
  0x2e   :  { %165 = dma.done.wait [#allocation4], 16  }
  0x2f   :  { %166 = vsyncadd [#allocation4], 4294967280 }
  0x30   :  { %167 = dma.done.wait [#allocation7], 16  }
  0x31   :  { %168 = vsyncadd [#allocation7], 4294967280 }
  0x32   :  { %97 = vsyncpa [#allocation3], 1 }
  0x33   :  { %98 = vsyncpa [#allocation4], 1 }
  0x34   :  { %99 = vsyncpa [#allocation7], 1 }

</bundles_post_ra>
